<compile_context>
chip_gen: v5e
topology: v5e:2x2
jax: 0.10.0
libtpu: 0.0.40
codegen_flags: <defaults>
</compile_context>

<pallas_src>
import functools

import jax
import jax.numpy as jnp
from jax.experimental import pallas as pl
from jax.experimental.pallas import tpu as pltpu

NEG_SLOPE = 0.01          # nn.LeakyReLU() default
NUM_HIDDEN_BLOCKS = 5
LANES = 128


def _round_up(x, m):
    return ((x + m - 1) // m) * m


def _cdiv(a, b):
    return (a + b - 1) // b


def _bf16_valu_supported():
    """bf16 elementwise is a win on v6e/v7x (bf16-native VPU); keep f32 on <= v5."""
    try:
        kind = jax.devices()[0].device_kind.lower()
    except Exception:
        return False
    return not any(t in kind for t in ("v2", "v3", "v4", "v5"))


def dqn_kernel(x_ref, w_in_ref, w_hid_ref, w_out_ref, b_ref, out_ref, *, act_dtype):
    # x_ref:     [TB, IN]        bf16
    # w_in_ref:  [IN, HP]        bf16   (HP = hidden padded to 128 lanes)
    # w_hid_ref: [5, HP, HP]     bf16
    # w_out_ref: [1, HP]         f32    (head weight row)
    # b_ref:     [7, HP]         f32    (rows 0..5 = layer biases, row 6 lane 0 = head bias)
    # out_ref:   [TB, 1]         f32
    # act_dtype: static; f32 on v5e, bf16 on v6e/v7x (bf16-native VPU).

    # Layer 0: Linear(in -> hidden), no activation (matches the module).
    h = jnp.dot(x_ref[...], w_in_ref[...], preferred_element_type=jnp.float32)
    h = h.astype(act_dtype) + b_ref[0:1, :].astype(act_dtype)

    # 5 x (Linear(hidden -> hidden) + LeakyReLU); MXU bf16 inputs / f32 accumulation,
    # elementwise in act_dtype, LeakyReLU in max-form (2 VALU ops, not 3).
    for li in range(NUM_HIDDEN_BLOCKS):
        z = jnp.dot(h.astype(jnp.bfloat16), w_hid_ref[li],
                    preferred_element_type=jnp.float32)
        z = z.astype(act_dtype) + b_ref[li + 1:li + 2, :].astype(act_dtype)
        h = jnp.maximum(z, NEG_SLOPE * z)

    # Output head Linear(hidden -> 1): VPU broadcast-mul + lane reduction in f32
    # (skips a wasteful N=1 MXU matmul).  h * f32 weights promotes to f32.
    head = jnp.sum(h * w_out_ref[...], axis=-1, keepdims=True)           # [TB, 1] f32
    out_ref[...] = (head + b_ref[6:7, 0:1]).astype(out_ref.dtype)


@functools.partial(jax.jit, static_argnames=("tb_max", "bf16_elementwise"))
def dqn_forward(x, w_list, b_list, tb_max=4096, bf16_elementwise=None):
    """x: [B, in_size] f32. w_list[i]: [in_i, out_i] f32 (pre-transposed vs torch),
    b_list[i]: [out_i] f32. Returns [B, 1] f32."""
    if bf16_elementwise is None:
        bf16_elementwise = _bf16_valu_supported()
    act_dtype = jnp.bfloat16 if bf16_elementwise else jnp.float32

    B, in_size = x.shape
    hidden = w_list[0].shape[1]
    hp = _round_up(max(hidden, 1), LANES)

    # Batch tiling:
    #   * tb is always a multiple of 8 (sublane alignment; robust to any tb_max),
    #   * >= 2 grid steps when B > 8 so both v7x TensorCores get work,
    #   * tb capped at tb_max (default 4096: fits v7x's 64 MiB VMEM with headroom).
    tb_max = max(8, (tb_max // 8) * 8)
    n_tiles = max(1, _cdiv(B, tb_max))
    if B > 8:
        n_tiles = max(n_tiles, 2)
    tb = _round_up(_cdiv(B, n_tiles), 8)
    b_pad = n_tiles * tb

    # Pad + pre-cast the input to bf16: halves x DMA/VMEM and removes the per-step cast.
    x_p = jnp.pad(x.astype(jnp.float32), ((0, b_pad - B), (0, 0))).astype(jnp.bfloat16)

    # Pack / zero-pad params. Padded lanes stay exactly zero, so they never leak into
    # later layers (LeakyReLU(0) == 0), and the head weight is zero there anyway.
    w_in = jnp.zeros((in_size, hp), jnp.float32).at[:, :hidden].set(w_list[0])
    w_hid = jnp.zeros((NUM_HIDDEN_BLOCKS, hp, hp), jnp.float32)
    for i in range(NUM_HIDDEN_BLOCKS):
        w_hid = w_hid.at[i, :hidden, :hidden].set(w_list[1 + i])
    w_out = jnp.zeros((1, hp), jnp.float32).at[0, :hidden].set(w_list[6][:, 0])
    b_all = jnp.zeros((7, hp), jnp.float32)
    for i in range(6):
        b_all = b_all.at[i, :hidden].set(b_list[i])
    b_all = b_all.at[6, 0].set(b_list[6][0])

    # MXU is bf16-native: store matmul weights as bf16 (accumulation stays f32 in-kernel).
    w_in = w_in.astype(jnp.bfloat16)
    w_hid = w_hid.astype(jnp.bfloat16)

    # Advisory cost estimate so XLA schedules surrounding pad/pack ops around the call.
    flops = 2 * b_pad * (in_size * hp + NUM_HIDDEN_BLOCKS * hp * hp + hp)
    bytes_accessed = (x_p.size * 2 + b_pad * 4 + w_in.size * 2 + w_hid.size * 2
                      + w_out.size * 4 + b_all.size * 4)

    out = pl.pallas_call(
        functools.partial(dqn_kernel, act_dtype=act_dtype),
        out_shape=jax.ShapeDtypeStruct((b_pad, 1), jnp.float32),
        grid=(n_tiles,),
        in_specs=[
            pl.BlockSpec((tb, in_size), lambda i: (i, 0)),                 # x tiled over batch
            pl.BlockSpec((in_size, hp), lambda i: (0, 0)),                 # resident weights
            pl.BlockSpec((NUM_HIDDEN_BLOCKS, hp, hp), lambda i: (0, 0, 0)),
            pl.BlockSpec((1, hp), lambda i: (0, 0)),
            pl.BlockSpec((7, hp), lambda i: (0, 0)),
        ],
        out_specs=pl.BlockSpec((tb, 1), lambda i: (i, 0)),
        compiler_params=pltpu.CompilerParams(
            dimension_semantics=("parallel",),           # megacore sharding on v7x
            vmem_limit_bytes=48 * 1024 * 1024),          # big tiles are legal on v5e too
        cost_estimate=pl.CostEstimate(
            flops=flops, transcendentals=0, bytes_accessed=bytes_accessed),
    )(x_p, w_in, w_hid, w_out, b_all)
    return out[:B]


def init_dqn_params(key, in_size, hidden):
    """PyTorch-style nn.Linear init U(-1/sqrt(fan_in), 1/sqrt(fan_in)); weights stored [in, out]."""
    dims = [(in_size, hidden)] + [(hidden, hidden)] * NUM_HIDDEN_BLOCKS + [(hidden, 1)]
    w_list, b_list = [], []
    for fan_in, fan_out in dims:
        key, kw, kb = jax.random.split(key, 3)
        bound = 1.0 / (fan_in ** 0.5)
        w_list.append(jax.random.uniform(kw, (fan_in, fan_out), jnp.float32, -bound, bound))
        b_list.append(jax.random.uniform(kb, (fan_out,), jnp.float32, -bound, bound))
    return w_list, b_list


def dqn_reference(x, w_list, b_list, bf16_matmul=True, act_dtype=jnp.float32):
    """Pure-JAX reference. With bf16_matmul/act_dtype matching the kernel config it mirrors the
    kernel's MXU/VPU precision; with (False, float32) it is the exact f32 PyTorch forward."""
    mm_cast = (lambda a: a.astype(jnp.bfloat16)) if bf16_matmul else (lambda a: a)
    h = jnp.dot(mm_cast(x), mm_cast(w_list[0]), preferred_element_type=jnp.float32)
    h = h.astype(act_dtype) + b_list[0].astype(act_dtype)
    for i in range(NUM_HIDDEN_BLOCKS):
        z = jnp.dot(mm_cast(h), mm_cast(w_list[1 + i]), preferred_element_type=jnp.float32)
        z = z.astype(act_dtype) + b_list[1 + i].astype(act_dtype)
        h = jnp.maximum(z, NEG_SLOPE * z)
    # Head stays f32 (the kernel computes it as an f32 VPU reduction).
    head = jnp.sum(h.astype(jnp.float32) * w_list[6][:, 0][None, :], axis=-1, keepdims=True)
    return head + b_list[6][0]


if __name__ == "__main__":
    key = jax.random.PRNGKey(0)
    k_params, k_x, k_x2 = jax.random.split(key, 3)

    in_size, hidden = 16, 32
    w_list, b_list = init_dqn_params(k_params, in_size, hidden)

    bf16_elem = _bf16_valu_supported()
    act_dtype = jnp.bfloat16 if bf16_elem else jnp.float32

    # Small example (batch=2): single grid step.
    x = jax.random.normal(k_x, (2, in_size), jnp.float32)
    out = jax.block_until_ready(dqn_forward(x, w_list, b_list, bf16_elementwise=bf16_elem))
    ref = dqn_reference(x, w_list, b_list, bf16_matmul=True, act_dtype=act_dtype)
    ref_f32 = dqn_reference(x, w_list, b_list, bf16_matmul=False, act_dtype=jnp.float32)
    assert out.shape == (2, 1)
    assert jnp.allclose(out, ref, atol=2e-2, rtol=2e-2), (out, ref)
    assert jnp.allclose(out, ref_f32, atol=1e-1, rtol=1e-1), (out, ref_f32)

    # Larger batch exercising the multi-step grid + remainder padding path
    # (B=300, tb_max=128 -> tb=104, 3 grid steps).
    x2 = jax.random.normal(k_x2, (300, in_size), jnp.float32)
    out2 = jax.block_until_ready(
        dqn_forward(x2, w_list, b_list, tb_max=128, bf16_elementwise=bf16_elem))
    ref2 = dqn_reference(x2, w_list, b_list, bf16_matmul=True, act_dtype=act_dtype)
    assert out2.shape == (300, 1)
    assert jnp.allclose(out2, ref2, atol=2e-2, rtol=2e-2)

    # Default-tiled path: B < tb_max still yields >=2 grid steps (v7x megacore coverage).
    x3 = jax.random.normal(jax.random.PRNGKey(3), (1000, in_size), jnp.float32)
    out3 = jax.block_until_ready(dqn_forward(x3, w_list, b_list, bf16_elementwise=bf16_elem))
    ref3 = dqn_reference(x3, w_list, b_list, bf16_matmul=True, act_dtype=act_dtype)
    assert out3.shape == (1000, 1)
    assert jnp.allclose(out3, ref3, atol=2e-2, rtol=2e-2)

    print("KERNEL_OK")
</pallas_src>

<mosaic_0001>
module attributes {stable_mosaic.version = 11 : i64} {
  func.func @dqn_kernel(%arg0: i32, %arg1: memref<8x16xbf16, #tpu.memory_space<vmem>>, %arg2: memref<16x128xbf16, #tpu.memory_space<vmem>>, %arg3: memref<5x128x128xbf16, #tpu.memory_space<vmem>>, %arg4: memref<1x128xf32, #tpu.memory_space<vmem>>, %arg5: memref<7x128xf32, #tpu.memory_space<vmem>>, %arg6: memref<8x1xf32, #tpu.memory_space<vmem>>) attributes {dimension_semantics = [#tpu.dimension_semantics<parallel>], iteration_bounds = array<i64: 1>, scalar_prefetch = 0 : i64, scratch_operands = 0 : i64, tpu.core_type = #tpu.core_type<tc>, window_params = [{transform_indices = @transform_0, window_bounds = array<i64: 8, 16>}, {pipeline_mode = #tpu.pipeline_mode<synchronous>, transform_indices = @transform_1, window_bounds = array<i64: 16, 128>}, {pipeline_mode = #tpu.pipeline_mode<synchronous>, transform_indices = @transform_2, window_bounds = array<i64: 5, 128, 128>}, {pipeline_mode = #tpu.pipeline_mode<synchronous>, transform_indices = @transform_3, window_bounds = array<i64: 1, 128>}, {pipeline_mode = #tpu.pipeline_mode<synchronous>, transform_indices = @transform_4, window_bounds = array<i64: 7, 128>}, {transform_indices = @transform_5, window_bounds = array<i64: 8, 1>}]} {
    %c0 = arith.constant 0 : index
    %c0_0 = arith.constant 0 : index
    %0 = vector.load %arg1[%c0, %c0_0] : memref<8x16xbf16, #tpu.memory_space<vmem>>, vector<8x16xbf16>
    %c0_1 = arith.constant 0 : index
    %c0_2 = arith.constant 0 : index
    %1 = vector.load %arg2[%c0_1, %c0_2] : memref<16x128xbf16, #tpu.memory_space<vmem>>, vector<16x128xbf16>
    %cst = arith.constant dense<0.000000e+00> : vector<8x128xf32>
    %2 = tpu.matmul %0, %1, %cst {dimension_numbers = #tpu.dot_dimension_numbers<[1], [0], [0], [1], [0, 0, 1, 1], [], []>} : vector<8x16xbf16>, vector<16x128xbf16>, vector<8x128xf32> -> vector<8x128xf32>
    %3 = arith.truncf %2 : vector<8x128xf32> to vector<8x128xbf16>
    %c0_3 = arith.constant 0 : index
    %c0_4 = arith.constant 0 : index
    %4 = vector.load %arg5[%c0_3, %c0_4] : memref<7x128xf32, #tpu.memory_space<vmem>>, vector<1x128xf32>
    %5 = arith.truncf %4 : vector<1x128xf32> to vector<1x128xbf16>
    %6 = vector.broadcast %5 : vector<1x128xbf16> to vector<8x128xbf16>
    %7 = arith.addf %3, %6 : vector<8x128xbf16>
    %c0_5 = arith.constant 0 : index
    %c0_6 = arith.constant 0 : index
    %c0_7 = arith.constant 0 : index
    %8 = vector.load %arg3[%c0_5, %c0_6, %c0_7] : memref<5x128x128xbf16, #tpu.memory_space<vmem>>, vector<1x128x128xbf16>
    %9 = vector.shape_cast %8 : vector<1x128x128xbf16> to vector<128x128xbf16>
    %cst_8 = arith.constant dense<0.000000e+00> : vector<8x128xf32>
    %10 = tpu.matmul %7, %9, %cst_8 {dimension_numbers = #tpu.dot_dimension_numbers<[1], [0], [0], [1], [0, 0, 1, 1], [], []>} : vector<8x128xbf16>, vector<128x128xbf16>, vector<8x128xf32> -> vector<8x128xf32>
    %11 = arith.truncf %10 : vector<8x128xf32> to vector<8x128xbf16>
    %c1 = arith.constant 1 : index
    %c0_9 = arith.constant 0 : index
    %12 = vector.load %arg5[%c1, %c0_9] : memref<7x128xf32, #tpu.memory_space<vmem>>, vector<1x128xf32>
    %13 = arith.truncf %12 : vector<1x128xf32> to vector<1x128xbf16>
    %14 = vector.broadcast %13 : vector<1x128xbf16> to vector<8x128xbf16>
    %15 = arith.addf %11, %14 : vector<8x128xbf16>
    %cst_10 = arith.constant 1.000980e-02 : bf16
    %16 = vector.broadcast %cst_10 : bf16 to vector<8x128xbf16>
    %17 = arith.mulf %16, %15 : vector<8x128xbf16>
    %18 = arith.maximumf %15, %17 : vector<8x128xbf16>
    %c1_11 = arith.constant 1 : index
    %c0_12 = arith.constant 0 : index
    %c0_13 = arith.constant 0 : index
    %19 = vector.load %arg3[%c1_11, %c0_12, %c0_13] : memref<5x128x128xbf16, #tpu.memory_space<vmem>>, vector<1x128x128xbf16>
    %20 = vector.shape_cast %19 : vector<1x128x128xbf16> to vector<128x128xbf16>
    %cst_14 = arith.constant dense<0.000000e+00> : vector<8x128xf32>
    %21 = tpu.matmul %18, %20, %cst_14 {dimension_numbers = #tpu.dot_dimension_numbers<[1], [0], [0], [1], [0, 0, 1, 1], [], []>} : vector<8x128xbf16>, vector<128x128xbf16>, vector<8x128xf32> -> vector<8x128xf32>
    %22 = arith.truncf %21 : vector<8x128xf32> to vector<8x128xbf16>
    %c2 = arith.constant 2 : index
    %c0_15 = arith.constant 0 : index
    %23 = vector.load %arg5[%c2, %c0_15] : memref<7x128xf32, #tpu.memory_space<vmem>>, vector<1x128xf32>
    %24 = arith.truncf %23 : vector<1x128xf32> to vector<1x128xbf16>
    %25 = vector.broadcast %24 : vector<1x128xbf16> to vector<8x128xbf16>
    %26 = arith.addf %22, %25 : vector<8x128xbf16>
    %cst_16 = arith.constant 1.000980e-02 : bf16
    %27 = vector.broadcast %cst_16 : bf16 to vector<8x128xbf16>
    %28 = arith.mulf %27, %26 : vector<8x128xbf16>
    %29 = arith.maximumf %26, %28 : vector<8x128xbf16>
    %c2_17 = arith.constant 2 : index
    %c0_18 = arith.constant 0 : index
    %c0_19 = arith.constant 0 : index
    %30 = vector.load %arg3[%c2_17, %c0_18, %c0_19] : memref<5x128x128xbf16, #tpu.memory_space<vmem>>, vector<1x128x128xbf16>
    %31 = vector.shape_cast %30 : vector<1x128x128xbf16> to vector<128x128xbf16>
    %cst_20 = arith.constant dense<0.000000e+00> : vector<8x128xf32>
    %32 = tpu.matmul %29, %31, %cst_20 {dimension_numbers = #tpu.dot_dimension_numbers<[1], [0], [0], [1], [0, 0, 1, 1], [], []>} : vector<8x128xbf16>, vector<128x128xbf16>, vector<8x128xf32> -> vector<8x128xf32>
    %33 = arith.truncf %32 : vector<8x128xf32> to vector<8x128xbf16>
    %c3 = arith.constant 3 : index
    %c0_21 = arith.constant 0 : index
    %34 = vector.load %arg5[%c3, %c0_21] : memref<7x128xf32, #tpu.memory_space<vmem>>, vector<1x128xf32>
    %35 = arith.truncf %34 : vector<1x128xf32> to vector<1x128xbf16>
    %36 = vector.broadcast %35 : vector<1x128xbf16> to vector<8x128xbf16>
    %37 = arith.addf %33, %36 : vector<8x128xbf16>
    %cst_22 = arith.constant 1.000980e-02 : bf16
    %38 = vector.broadcast %cst_22 : bf16 to vector<8x128xbf16>
    %39 = arith.mulf %38, %37 : vector<8x128xbf16>
    %40 = arith.maximumf %37, %39 : vector<8x128xbf16>
    %c3_23 = arith.constant 3 : index
    %c0_24 = arith.constant 0 : index
    %c0_25 = arith.constant 0 : index
    %41 = vector.load %arg3[%c3_23, %c0_24, %c0_25] : memref<5x128x128xbf16, #tpu.memory_space<vmem>>, vector<1x128x128xbf16>
    %42 = vector.shape_cast %41 : vector<1x128x128xbf16> to vector<128x128xbf16>
    %cst_26 = arith.constant dense<0.000000e+00> : vector<8x128xf32>
    %43 = tpu.matmul %40, %42, %cst_26 {dimension_numbers = #tpu.dot_dimension_numbers<[1], [0], [0], [1], [0, 0, 1, 1], [], []>} : vector<8x128xbf16>, vector<128x128xbf16>, vector<8x128xf32> -> vector<8x128xf32>
    %44 = arith.truncf %43 : vector<8x128xf32> to vector<8x128xbf16>
    %c4 = arith.constant 4 : index
    %c0_27 = arith.constant 0 : index
    %45 = vector.load %arg5[%c4, %c0_27] : memref<7x128xf32, #tpu.memory_space<vmem>>, vector<1x128xf32>
    %46 = arith.truncf %45 : vector<1x128xf32> to vector<1x128xbf16>
    %47 = vector.broadcast %46 : vector<1x128xbf16> to vector<8x128xbf16>
    %48 = arith.addf %44, %47 : vector<8x128xbf16>
    %cst_28 = arith.constant 1.000980e-02 : bf16
    %49 = vector.broadcast %cst_28 : bf16 to vector<8x128xbf16>
    %50 = arith.mulf %49, %48 : vector<8x128xbf16>
    %51 = arith.maximumf %48, %50 : vector<8x128xbf16>
    %c4_29 = arith.constant 4 : index
    %c0_30 = arith.constant 0 : index
    %c0_31 = arith.constant 0 : index
    %52 = vector.load %arg3[%c4_29, %c0_30, %c0_31] : memref<5x128x128xbf16, #tpu.memory_space<vmem>>, vector<1x128x128xbf16>
    %53 = vector.shape_cast %52 : vector<1x128x128xbf16> to vector<128x128xbf16>
    %cst_32 = arith.constant dense<0.000000e+00> : vector<8x128xf32>
    %54 = tpu.matmul %51, %53, %cst_32 {dimension_numbers = #tpu.dot_dimension_numbers<[1], [0], [0], [1], [0, 0, 1, 1], [], []>} : vector<8x128xbf16>, vector<128x128xbf16>, vector<8x128xf32> -> vector<8x128xf32>
    %55 = arith.truncf %54 : vector<8x128xf32> to vector<8x128xbf16>
    %c5 = arith.constant 5 : index
    %c0_33 = arith.constant 0 : index
    %56 = vector.load %arg5[%c5, %c0_33] : memref<7x128xf32, #tpu.memory_space<vmem>>, vector<1x128xf32>
    %57 = arith.truncf %56 : vector<1x128xf32> to vector<1x128xbf16>
    %58 = vector.broadcast %57 : vector<1x128xbf16> to vector<8x128xbf16>
    %59 = arith.addf %55, %58 : vector<8x128xbf16>
    %cst_34 = arith.constant 1.000980e-02 : bf16
    %60 = vector.broadcast %cst_34 : bf16 to vector<8x128xbf16>
    %61 = arith.mulf %60, %59 : vector<8x128xbf16>
    %62 = arith.maximumf %59, %61 : vector<8x128xbf16>
    %c0_35 = arith.constant 0 : index
    %c0_36 = arith.constant 0 : index
    %63 = vector.load %arg4[%c0_35, %c0_36] : memref<1x128xf32, #tpu.memory_space<vmem>>, vector<1x128xf32>
    %64 = arith.extf %62 : vector<8x128xbf16> to vector<8x128xf32>
    %65 = vector.broadcast %63 : vector<1x128xf32> to vector<8x128xf32>
    %66 = arith.mulf %64, %65 : vector<8x128xf32>
    %cst_37 = arith.constant dense<0.000000e+00> : vector<8xf32>
    %67 = vector.multi_reduction <add>, %66, %cst_37 [1] : vector<8x128xf32> to vector<8xf32>
    %68 = vector.shape_cast %67 : vector<8xf32> to vector<8x1xf32>
    %c6 = arith.constant 6 : index
    %c0_38 = arith.constant 0 : index
    %69 = vector.load %arg5[%c6, %c0_38] : memref<7x128xf32, #tpu.memory_space<vmem>>, vector<1x1xf32>
    %70 = vector.broadcast %69 : vector<1x1xf32> to vector<8x1xf32>
    %71 = arith.addf %68, %70 : vector<8x1xf32>
    %c0_39 = arith.constant 0 : index
    %c0_40 = arith.constant 0 : index
    %72 = vector.load %arg6[%c0_39, %c0_40] : memref<8x1xf32, #tpu.memory_space<vmem>>, vector<8x1xf32>
    tpu.vector_store %arg6[%c0_39, %c0_40], %71 {strides = array<i32>} : memref<8x1xf32, #tpu.memory_space<vmem>>, vector<8x1xf32>,
    return
  }
  func.func @transform_0(%arg0: i32) -> (i32, i32) {
    %c0_i32 = arith.constant 0 : i32
    %c0_i32_0 = arith.constant 0 : i32
    return %arg0, %c0_i32 : i32, i32
  }
  func.func @transform_1(%arg0: i32) -> (i32, i32) {
    %c0_i32 = arith.constant 0 : i32
    %c0_i32_0 = arith.constant 0 : i32
    %c0_i32_1 = arith.constant 0 : i32
    return %c0_i32, %c0_i32_0 : i32, i32
  }
  func.func @transform_2(%arg0: i32) -> (i32, i32, i32) {
    %c0_i32 = arith.constant 0 : i32
    %c0_i32_0 = arith.constant 0 : i32
    %c0_i32_1 = arith.constant 0 : i32
    %c0_i32_2 = arith.constant 0 : i32
    return %c0_i32, %c0_i32_0, %c0_i32_1 : i32, i32, i32
  }
  func.func @transform_3(%arg0: i32) -> (i32, i32) {
    %c0_i32 = arith.constant 0 : i32
    %c0_i32_0 = arith.constant 0 : i32
    %c0_i32_1 = arith.constant 0 : i32
    return %c0_i32, %c0_i32_0 : i32, i32
  }
  func.func @transform_4(%arg0: i32) -> (i32, i32) {
    %c0_i32 = arith.constant 0 : i32
    %c0_i32_0 = arith.constant 0 : i32
    %c0_i32_1 = arith.constant 0 : i32
    return %c0_i32, %c0_i32_0 : i32, i32
  }
  func.func @transform_5(%arg0: i32) -> (i32, i32) {
    %c0_i32 = arith.constant 0 : i32
    %c0_i32_0 = arith.constant 0 : i32
    return %arg0, %c0_i32 : i32, i32
  }
}

</mosaic_0001>

<bundles_post_ra>
// kernel: dqn_forward.1
= control target key start
LH: loop header
LB: loop body
LE: loop exit
PB: predicated region body
PF: predicated region fallthrough
CT: control target
= control target key end

     0   :  { %vm30_vm0 = vcmask 130048   ;;  %vm543_vm1 = vcmask 7168   ;;  %s1004_s1 = inlined_call_operand.vmem [shape: bf16[16,128], index: 1, kind: input, shape index: {}]   ;;  %s1005_s0 = inlined_call_operand.vmem [shape: bf16[8,16], index: 0, kind: input, shape index: {}]   ;;  %s1006_s2 = inlined_call_operand.vmem [shape: bf16[5,128,128], index: 2, kind: input, shape index: {}]   ;;  %s1007_s4 = inlined_call_operand.vmem [shape: f32[7,128], index: 4, kind: input, shape index: {}]   ;;  %s1008_s3 = inlined_call_operand.vmem [shape: f32[1,128], index: 3, kind: input, shape index: {}]   ;;  %s1009_s5 = inlined_call_operand.vmem [shape: f32[8,1], index: 5, kind: output, shape index: {}]  }
   0x1   :  { %v778_v0 = vld [vmem:[%s1004_s1] sm:$0xff]  ;;  %v786_v1 = vld [vmem:[%s1006_s2 + $0x38] sm:$0xff]  ;;  %v785_v3 = vld [vmem:[%s1006_s2 + $0x30] sm:$0xff] }
   0x2   :  { %41 = vmatpush.bf16.msra.mxu0 %v778_v0  ;;  %v21_v2 = vld [vmem:[%s1005_s0] sm:$0xf]  ;;  %122 = vmatpush.bf16.msra.mxu1 %v786_v1  ;;  %v784_v4 = vld [vmem:[%s1006_s2 + $0x28] sm:$0xff]  ;;  %v782_v6 = vld [vmem:[%s1006_s2 + $0x18] sm:$0xff] }
   0x3   :  { %v783_v5 = vld [vmem:[%s1006_s2 + $0x20] sm:$0xff]  ;;  %v781_v7 = vld [vmem:[%s1006_s2 + $0x10] sm:$0xff]  ;;  %v780_v8 = vld [vmem:[%s1006_s2 + $0x8] sm:$0xff] }
   0x4   :  { %v779_v9 = vld [vmem:[%s1006_s2] sm:$0xff]  ;;  %v794_v10 = vld [vmem:[%s1006_s2 + $0x78] sm:$0xff]  ;;  %v793_v11 = vld [vmem:[%s1006_s2 + $0x70] sm:$0xff] }
   0x5   :  { %553 = vmatmul.msk.bf16.vlgmr.msra.gmra.mxu0 %vm30_vm0, %v21_v2  ;;  %217 = vmatpush.bf16.msra.mxu2 %v794_v10  ;;  %v792_v12 = vld [vmem:[%s1006_s2 + $0x68] sm:$0xff]  ;;  %v48_v13 = vld [vmem:[%s1007_s4] sm:$0x1]  ;;  %v790_v25 = vld [vmem:[%s1006_s2 + $0x58] sm:$0xff] }
   0x6   :  { %123 = vmatpush.bf16.msra.mxu1 %v785_v3  ;;  %v791_v14 = vld [vmem:[%s1006_s2 + $0x60] sm:$0xff]  ;;  %v49_v15 = vpack.c.bf16 %v48_v13, %v48_v13  ;;  %v789_v26 = vld [vmem:[%s1006_s2 + $0x50] sm:$0xff]  ;;  %v788_v27 = vld [vmem:[%s1006_s2 + $0x48] sm:$0xff] }
   0x7   :  { %v787_v28 = vld [vmem:[%s1006_s2 + $0x40] sm:$0xff]  ;;  %v802_v29 = vld [vmem:[%s1006_s2 + $0xb8] sm:$0xff]  ;;  %v801_v31 = vld [vmem:[%s1006_s2 + $0xb0] sm:$0xff] }
   0x8   :  { %v51_v16 = vpack.i.b16 %v49_v15, %v49_v15  ;;  %v136_v30 = vld [vmem:[%s1007_s4 + $0x1] sm:$0x1]  ;;  %312 = vmatpush.bf16.msra.mxu3 %v802_v29  ;;  %v800_v33 = vld [vmem:[%s1006_s2 + $0xa8] sm:$0xff]  ;;  %v798_v48 = vld [vmem:[%s1006_s2 + $0x98] sm:$0xff] }
   0x9   :  { %218 = vmatpush.bf16.msra.mxu2 %v793_v11  ;;  %v137_v32 = vpack.c.bf16 %v136_v30, %v136_v30  ;;  %v799_v35 = vld [vmem:[%s1006_s2 + $0xa0] sm:$0xff]  ;;  %v797_v49 = vld [vmem:[%s1006_s2 + $0x90] sm:$0xff]  ;;  %v796_v50 = vld [vmem:[%s1006_s2 + $0x88] sm:$0xff] }
   0xa   :  { %124 = vmatpush.bf16.msra.mxu1 %v784_v4  ;;  %v53_v17 = vperm.slane %v51_v16, 0  ;;  %v795_v51 = vld [vmem:[%s1006_s2 + $0x80] sm:$0xff]  ;;  %v810_v52 = vld [vmem:[%s1006_s2 + $0xf8] sm:$0xff]  ;;  %v809_v54 = vld [vmem:[%s1006_s2 + $0xf0] sm:$0xff] }
   0xb   :  { %v139_v34 = vpack.i.b16 %v137_v32, %v137_v32  ;;  %v231_v53 = vld [vmem:[%s1007_s4 + $0x2] sm:$0x1]  ;;  %407 = vmatpush.bf16.msrb.mxu0 %v810_v52  ;;  %v808_v56 = vld [vmem:[%s1006_s2 + $0xe8] sm:$0xff]  ;;  %v818_v11 = vld [vmem:[%s1006_s2 + $0x138] sm:$0xff] }
   0xc   :  { %v55_v20 = vunpack.c.l.bf16 %v53_v17  ;;  %313 = vmatpush.bf16.msra.mxu3 %v801_v31  ;;  %v232_v55 = vpack.c.bf16 %v231_v53, %v231_v53  ;;  %v807_v58 = vld [vmem:[%s1006_s2 + $0xe0] sm:$0xff]  ;;  %v817_v13 = vld [vmem:[%s1006_s2 + $0x130] sm:$0xff]  ;;  %v816_v15 = vld [vmem:[%s1006_s2 + $0x128] sm:$0xff] }
   0xd   :  { %219 = vmatpush.bf16.msra.mxu2 %v792_v12  ;;  %v141_v36 = vperm.slane %v139_v34, 0  ;;  %v803_v10 = vld [vmem:[%s1006_s2 + $0xc0] sm:$0xff]  ;;  %v814_v30 = vld [vmem:[%s1006_s2 + $0x118] sm:$0xff]  ;;  %v813_v31 = vld [vmem:[%s1006_s2 + $0x110] sm:$0xff] }
   0xe   :  { %125 = vmatpush.bf16.msra.mxu1 %v783_v5  ;;  %v234_v57 = vpack.i.b16 %v232_v55, %v232_v55  ;;  %v326_v12 = vld [vmem:[%s1007_s4 + $0x3] sm:$0x1]  ;;  %v812_v32 = vld [vmem:[%s1006_s2 + $0x108] sm:$0xff]  ;;  %v421_v34 = vld [vmem:[%s1007_s4 + $0x4] sm:$0x1] }
   0xf   :  { %v143_v39 = vunpack.c.l.bf16 %v141_v36  ;;  %408 = vmatpush.bf16.msrb.mxu0 %v809_v54  ;;  %v815_v17 = vld [vmem:[%s1006_s2 + $0x120] sm:$0xff] }
  0x10   :  { %314 = vmatpush.bf16.msra.mxu3 %v800_v33  ;;  %v236_v59 = vperm.slane %v234_v57, 0  ;;  %v811_v33 = vld [vmem:[%s1006_s2 + $0x100] sm:$0xff] }
  0x11   :  { %220 = vmatpush.bf16.msra.mxu2 %v791_v14  ;;  %v327_v14 = vpack.c.bf16 %v326_v12, %v326_v12 }
  0x12   :  { %126 = vmatpush.bf16.msra.mxu1 %v782_v6  ;;  %v238_v62 = vunpack.c.l.bf16 %v236_v59 }
  0x13   :  { %409 = vmatpush.bf16.msrb.mxu0 %v808_v56  ;;  %v329_v16 = vpack.i.b16 %v327_v14, %v327_v14 }
  0x14   :  { %315 = vmatpush.bf16.msra.mxu3 %v799_v35  ;;  %v422_v35 = vpack.c.bf16 %v421_v34, %v421_v34 }
  0x15   :  { %221 = vmatpush.bf16.msra.mxu2 %v790_v25 }
  0x16   :  { %127 = vmatpush.bf16.msra.mxu1 %v781_v7  ;;  %v806_v7 = vld [vmem:[%s1006_s2 + $0xd8] sm:$0xff]  ;;  %v424_v36 = vpack.i.b16 %v422_v35, %v422_v35 }
  0x17   :  { %410 = vmatpush.bf16.msrb.mxu0 %v807_v58 }
  0x18   :  { %316 = vmatpush.bf16.msra.mxu3 %v798_v48 }
  0x19   :  { %222 = vmatpush.bf16.msra.mxu2 %v789_v26 }
  0x1a   :  { %128 = vmatpush.bf16.msra.mxu1 %v780_v8  ;;  %v805_v8 = vld [vmem:[%s1006_s2 + $0xd0] sm:$0xff] }
  0x1b   :  { %411 = vmatpush.bf16.msrb.mxu0 %v806_v7 }
  0x1c   :  { %317 = vmatpush.bf16.msra.mxu3 %v797_v49  ;;  %v516_v49 = vld [vmem:[%s1007_s4 + $0x5] sm:$0x1] }
  0x1d   :  { %223 = vmatpush.bf16.msra.mxu2 %v788_v27 }
  0x1e   :  { %129 = vmatpush.bf16.msra.mxu1 %v779_v9  ;;  %v804_v9 = vld [vmem:[%s1006_s2 + $0xc8] sm:$0xff] }
  0x1f   :  { %412 = vmatpush.bf16.msrb.mxu0 %v805_v8 }
  0x20   :  { %318 = vmatpush.bf16.msra.mxu3 %v796_v50  ;;  %v517_v50 = vpack.c.bf16 %v516_v49, %v516_v49 }
  0x21   :  { %224 = vmatpush.bf16.msra.mxu2 %v787_v28 }
  0x22   :  { %502 = vmatpush.bf16.msrb.mxu1 %v818_v11 }
  0x23   :  { %413 = vmatpush.bf16.msrb.mxu0 %v804_v9 }
  0x24   :  { %319 = vmatpush.bf16.msra.mxu3 %v795_v51  ;;  %v519_v51 = vpack.i.b16 %v517_v50, %v517_v50 }
  0x26   :  { %503 = vmatpush.bf16.msrb.mxu1 %v817_v13  ;;  %v521_v52 = vperm.slane %v519_v51, 0 }
  0x27   :  { %414 = vmatpush.bf16.msrb.mxu0 %v803_v10 }
  0x28   :  { %v523_v55 = vunpack.c.l.bf16 %v521_v52 }
  0x2a   :  { %504 = vmatpush.bf16.msrb.mxu1 %v816_v15 }
  0x2e   :  { %505 = vmatpush.bf16.msrb.mxu1 %v815_v17 }
  0x32   :  { %506 = vmatpush.bf16.msrb.mxu1 %v814_v30 }
  0x36   :  { %507 = vmatpush.bf16.msrb.mxu1 %v813_v31 }
  0x3a   :  { %508 = vmatpush.bf16.msrb.mxu1 %v812_v32 }
  0x3e   :  { %509 = vmatpush.bf16.msrb.mxu1 %v811_v33 }
  0x82   :  { %v43_v18 = vpop.f32.mrf.mxu0 }
  0x83   :  { %v47_v19 = vpack.c.bf16 %v43_v18, %v43_v18  ;;  %v331_v18 = vperm.slane %v329_v16, 0 }
  0x85   :  { %v54_v21 = vunpack.c.l.bf16 %v47_v19 }
  0x87   :  { %v56_v22 = vadd.f32 %v55_v20, %v54_v21  ;;  %v333_v21 = vunpack.c.l.bf16 %v331_v18 }
  0x89   :  { %v57_v23 = vpack.c.bf16 %v56_v22, %v56_v22 }
  0x8a   :  { %v45_v24 = vpop.f32.mrf.mxu0 }
  0x8b   :  { %130 = vmatmul.bf16.vlgmr.msra.gmra.mxu1 %v57_v23 }
 0x108   :  { %v131_v37 = vpop.f32.mrf.mxu1 }
 0x109   :  { %v135_v38 = vpack.c.bf16 %v131_v37, %v131_v37  ;;  %v426_v37 = vperm.slane %v424_v36, 0 }
 0x10b   :  { %v142_v40 = vunpack.c.l.bf16 %v135_v38 }
 0x10d   :  { %v144_v41 = vadd.f32 %v143_v39, %v142_v40  ;;  %v428_v40 = vunpack.c.l.bf16 %v426_v37 }
 0x10f   :  { %v145_v42 = vpack.c.bf16 %v144_v41, %v144_v41 }
 0x110   :  { %v133_v43 = vpop.f32.mrf.mxu1 }
 0x111   :  { %v146_v44 = vunpack.c.l.bf16 %v145_v42 }
 0x113   :  { %v147_v45 = vmul.f32 0.010009766, %v146_v44 }
 0x115   :  { %v150_v46 = vmax.f32 %v146_v44, %v147_v45 }
 0x117   :  { %v151_v47 = vpack.c.bf16 %v150_v46, %v150_v46 }
 0x119   :  { %225 = vmatmul.bf16.vlgmr.msra.gmra.mxu2 %v151_v47 }
 0x19c   :  { %v226_v60 = vpop.f32.mrf.mxu2 }
 0x19d   :  { %v230_v61 = vpack.c.bf16 %v226_v60, %v226_v60 }
 0x19f   :  { %v237_v63 = vunpack.c.l.bf16 %v230_v61 }
 0x1a1   :  { %v239_v0 = vadd.f32 %v238_v62, %v237_v63 }
 0x1a3   :  { %v240_v1 = vpack.c.bf16 %v239_v0, %v239_v0  ;;  %v819_v0 = vld [vmem:[%s1008_s3] ss:$0 sm:$0xff] }
 0x1a4   :  { %v228_v2 = vpop.f32.mrf.mxu2 }
 0x1a5   :  { %v241_v3 = vunpack.c.l.bf16 %v240_v1 }
 0x1a7   :  { %v242_v4 = vmul.f32 0.010009766, %v241_v3 }
 0x1a9   :  { %v245_v5 = vmax.f32 %v241_v3, %v242_v4  ;;  %v820_v3 = vld [vmem:[%s1007_s4 + $0x6] ss:$0 sm:$0xff] }
 0x1ab   :  { %v246_v6 = vpack.c.bf16 %v245_v5, %v245_v5 }
 0x1ad   :  { %320 = vmatmul.bf16.vlgmr.msra.gmra.mxu3 %v246_v6 }
 0x230   :  { %v321_v19 = vpop.f32.mrf.mxu3 }
 0x231   :  { %v325_v20 = vpack.c.bf16 %v321_v19, %v321_v19 }
 0x233   :  { %v332_v22 = vunpack.c.l.bf16 %v325_v20 }
 0x235   :  { %v334_v23 = vadd.f32 %v333_v21, %v332_v22 }
 0x237   :  { %v335_v24 = vpack.c.bf16 %v334_v23, %v334_v23 }
 0x238   :  { %v323_v25 = vpop.f32.mrf.mxu3 }
 0x239   :  { %v336_v26 = vunpack.c.l.bf16 %v335_v24 }
 0x23b   :  { %v337_v27 = vmul.f32 0.010009766, %v336_v26 }
 0x23d   :  { %v340_v28 = vmax.f32 %v336_v26, %v337_v27 }
 0x23f   :  { %v341_v29 = vpack.c.bf16 %v340_v28, %v340_v28 }
 0x241   :  { %415 = vmatmul.bf16.vlgmr.msrb.gmra.mxu0 %v341_v29 }
 0x2be   :  { %v416_v38 = vpop.f32.mrf.mxu0 }
 0x2bf   :  { %v420_v39 = vpack.c.bf16 %v416_v38, %v416_v38 }
 0x2c1   :  { %v427_v41 = vunpack.c.l.bf16 %v420_v39 }
 0x2c3   :  { %v429_v42 = vadd.f32 %v428_v40, %v427_v41 }
 0x2c5   :  { %v430_v43 = vpack.c.bf16 %v429_v42, %v429_v42 }
 0x2c6   :  { %v418_v44 = vpop.f32.mrf.mxu0 }
 0x2c7   :  { %v431_v45 = vunpack.c.l.bf16 %v430_v43 }
 0x2c9   :  { %v432_v46 = vmul.f32 0.010009766, %v431_v45 }
 0x2cb   :  { %v435_v47 = vmax.f32 %v431_v45, %v432_v46 }
 0x2cd   :  { %v436_v48 = vpack.c.bf16 %v435_v47, %v435_v47 }
 0x2cf   :  { %510 = vmatmul.bf16.vlgmr.msrb.gmra.mxu1 %v436_v48 }
 0x34c   :  { %v511_v53 = vpop.f32.mrf.mxu1 }
 0x34d   :  { %v515_v54 = vpack.c.bf16 %v511_v53, %v511_v53 }
 0x34f   :  { %v522_v56 = vunpack.c.l.bf16 %v515_v54 }
 0x351   :  { %v524_v57 = vadd.f32 %v523_v55, %v522_v56 }
 0x353   :  { %v525_v58 = vpack.c.bf16 %v524_v57, %v524_v57 }
 0x354   :  { %v513_v59 = vpop.f32.mrf.mxu1 }
 0x355   :  { %v526_v60 = vunpack.c.l.bf16 %v525_v58 }
 0x357   :  { %v527_v61 = vmul.f32 0.010009766, %v526_v60 }
 0x359   :  { %v530_v62 = vmax.f32 %v526_v60, %v527_v61 }
 0x35b   :  { %v531_v63 = vpack.c.bf16 %v530_v62, %v530_v62 }
 0x35d   :  { %v533_v1 = vunpack.c.l.bf16 %v531_v63 }
 0x35f   :  { %v537_v2 = vmul.f32 %v819_v0, %v533_v1 }
 0x361   :  { %538 = vadd.xlane.f32.xlu0 %v537_v2 }
 0x3d4   :  { %v539_v4 = vpop.xlane.xlu0 %538 }
 0x3d5   :  { %v542_v5 = vadd.f32 %v820_v3, %v539_v4 }
 0x3d7   :  { %544 = vst.msk [vmem:[%s1009_s5] sm:$0xff] %vm543_vm1, %v542_v5 }

</bundles_post_ra>
